<compile_context>
chip_gen: v5e
topology: v5e:2x2
jax: 0.10.0
libtpu: 0.0.40
codegen_flags: <defaults>
</compile_context>

<pallas_src>
import jax
import jax.numpy as jnp
from jax.experimental import pallas as pl
from jax.experimental.pallas import tpu as pltpu


_SMALL_CUTOFF_BYTES = 1 << 20  # below this, fused XLA concatenate is faster


def _tpu_vmem_capacity_bytes():
    try:
        return int(pltpu.get_tpu_info().vmem_capacity_bytes)
    except Exception:
        return 64 << 20  # conservative (v7x per-TC physical)


def _row_slab_budget_bytes():
    # Budget for the live 4x double-buffered row slabs (2x inputs + 2x output):
    # ~1/5 of physical VMEM -> ~24 MiB on v5e/v6e (128 MiB), ~12 MiB on v7x.
    cap = _tpu_vmem_capacity_bytes()
    return min(24 << 20, max(4 << 20, cap // 5))


def _vmem_limit_bytes():
    # Explicit scoped-VMEM limit: 64 MiB on 128-MiB parts (v5e/v6e), 32 MiB on v7x.
    cap = _tpu_vmem_capacity_bytes()
    return int(min(64 << 20, cap // 2))


def _pick_row_tile(rows, w_total, itemsize):
    """Row-tile size: dtype-aware sublane multiple, VMEM-budgeted, >=2 grid steps."""
    sublane = 8 * max(1, 4 // itemsize)  # 8 for f32, 16 for bf16, 32 for int8/fp8
    if rows <= sublane:
        return rows  # full-extent block (allowed exception to the (8,128) rule)
    budget_rows = max(sublane, _row_slab_budget_bytes() // max(1, 4 * w_total * itemsize))
    tr = min(budget_rows, 1024, rows)
    if rows >= 2 * sublane:
        tr = min(tr, rows // 2)  # guarantee >=2 steps so v7x dual-TC sharding has work
    tr = max(sublane, (tr // sublane) * sublane)
    return tr


def _make_vmem_concat_kernel(n_inputs, widths, offsets, lane_aligned):
    if lane_aligned:
        # 128-lane aligned widths/offsets -> unmasked full-vreg window stores.
        def kernel(*refs):
            in_refs = refs[:n_inputs]
            o_ref = refs[n_inputs]
            for r, off, w in zip(in_refs, offsets, widths):
                o_ref[:, off:off + w] = r[...]
    else:
        # Unaligned widths -> concat in registers, one coalesced wide store.
        def kernel(*refs):
            in_refs = refs[:n_inputs]
            o_ref = refs[n_inputs]
            o_ref[...] = jnp.concatenate([r[...] for r in in_refs], axis=-1)
    return kernel


def _make_dma_concat_kernel(n_inputs, widths, offsets):
    # All refs live in HBM (pl.ANY); each input is DMA'd directly into its lane
    # window of the HBM output.  Four concurrent DMAs, then wait all.
    def kernel(*refs):
        in_refs = refs[:n_inputs]
        o_ref = refs[n_inputs]
        sem = refs[n_inputs + 1]
        copies = []
        for idx, (r, off, w) in enumerate(zip(in_refs, offsets, widths)):
            cp = pltpu.make_async_copy(r, o_ref.at[:, off:off + w], sem.at[idx])
            cp.start()
            copies.append(cp)
        for cp in copies:
            cp.wait()
    return kernel


def _concat_vmem(xs2d, lead, widths, offsets, rows, w_total, dtype, itemsize):
    n = len(xs2d)
    tr = _pick_row_tile(rows, w_total, itemsize)
    grid = (pl.cdiv(rows, tr),)
    lane_aligned = all(w % 128 == 0 for w in widths) and all(o % 128 == 0 for o in offsets)
    kernel = _make_vmem_concat_kernel(n, widths, offsets, lane_aligned)

    out2d = pl.pallas_call(
        kernel,
        out_shape=jax.ShapeDtypeStruct((rows, w_total), dtype),
        grid_spec=pltpu.PrefetchScalarGridSpec(
            num_scalar_prefetch=0,
            grid=grid,
            in_specs=[pl.BlockSpec((tr, w), lambda i: (i, 0)) for w in widths],
            out_specs=pl.BlockSpec((tr, w_total), lambda i: (i, 0)),
        ),
        compiler_params=pltpu.CompilerParams(
            dimension_semantics=("parallel",),
            vmem_limit_bytes=_vmem_limit_bytes(),
        ),
    )(*xs2d)
    return out2d.reshape(*lead, w_total)


def _concat_dma(xs2d, lead, widths, offsets, rows, w_total, dtype):
    n = len(xs2d)
    kernel = _make_dma_concat_kernel(n, widths, offsets)
    out2d = pl.pallas_call(
        kernel,
        out_shape=jax.ShapeDtypeStruct((rows, w_total), dtype),
        in_specs=[pl.BlockSpec(memory_space=pl.ANY)] * n,
        out_specs=pl.BlockSpec(memory_space=pl.ANY),
        scratch_shapes=[pltpu.SemaphoreType.DMA((n,))],
        compiler_params=pltpu.CompilerParams(
            vmem_limit_bytes=_vmem_limit_bytes(),
        ),
    )(*xs2d)
    return out2d.reshape(*lead, w_total)


def concat_last_dim(xs, mode="auto"):
    """Concatenate arrays along the last axis (torch.cat(dim=-1) semantics).

    mode: "auto" | "xla" | "vmem" | "dma"
    """
    lead = xs[0].shape[:-1]
    dtype = xs[0].dtype
    for x in xs:
        assert x.shape[:-1] == lead, "leading dims must match for cat(dim=-1)"
        assert x.dtype == dtype, "dtypes must match"

    widths = [int(x.shape[-1]) for x in xs]
    w_total = sum(widths)
    offsets = [sum(widths[:i]) for i in range(len(widths))]
    itemsize = jnp.dtype(dtype).itemsize

    rows = 1
    for d in lead:
        rows *= int(d)
    out_bytes = rows * w_total * itemsize

    if mode == "auto":
        if out_bytes < _SMALL_CUTOFF_BYTES:
            mode = "xla"  # tiny: XLA's fused concat beats any kernel launch
        elif all(w * itemsize >= 128 for w in widths):
            mode = "dma"  # biggest win at size; also preferred on v7x
        else:
            mode = "vmem"

    if mode == "xla":
        return jnp.concatenate(xs, axis=-1)

    xs2d = [x.reshape(rows, w) for x, w in zip(xs, widths)]

    if mode == "dma":
        try:
            return _concat_dma(xs2d, lead, widths, offsets, rows, w_total, dtype)
        except Exception:
            # TODO(synk): safety net only — fall back to the pipelined VMEM path
            # if direct HBM->HBM lane-window DMA is rejected on this toolchain.
            pass

    return _concat_vmem(xs2d, lead, widths, offsets, rows, w_total, dtype, itemsize)


if __name__ == "__main__":
    key = jax.random.PRNGKey(0)
    k = jax.random.split(key, 12)

    # --- 1) Small shapes consistent with the module (identical N,C,H; W varies).
    x1 = jax.random.normal(k[0], (2, 4, 16, 16), dtype=jnp.float32)
    x2 = jax.random.normal(k[1], (2, 4, 16, 8), dtype=jnp.float32)
    x3 = jax.random.normal(k[2], (2, 4, 16, 32), dtype=jnp.float32)
    x4 = jax.random.normal(k[3], (2, 4, 16, 16), dtype=jnp.float32)
    xs = [x1, x2, x3, x4]
    ref = jnp.concatenate(xs, axis=-1)

    # auto: tiny total -> routed to XLA concat (size cutoff)
    y_auto = jax.block_until_ready(concat_last_dim(xs, mode="auto"))
    assert y_auto.shape == (2, 4, 16, 72), y_auto.shape
    assert jnp.array_equal(y_auto, ref), "auto path mismatch"

    # force the Pallas VMEM (row-tiled, coalesced-store) kernel
    y_vmem = jax.block_until_ready(concat_last_dim(xs, mode="vmem"))
    assert jnp.array_equal(y_vmem, ref), "vmem path mismatch"

    # --- 2) 128-lane-aligned widths -> per-input unmasked window stores.
    a1 = jax.random.normal(k[4], (2, 4, 16, 128), dtype=jnp.float32)
    a2 = jax.random.normal(k[5], (2, 4, 16, 128), dtype=jnp.float32)
    a3 = jax.random.normal(k[6], (2, 4, 16, 256), dtype=jnp.float32)
    a4 = jax.random.normal(k[7], (2, 4, 16, 128), dtype=jnp.float32)
    as_ = [a1, a2, a3, a4]
    aref = jnp.concatenate(as_, axis=-1)
    y_aligned = jax.block_until_ready(concat_last_dim(as_, mode="vmem"))
    assert jnp.array_equal(y_aligned, aref), "aligned vmem path mismatch"

    # --- 3) DMA-only path: each input's row segment is >= 128 B.
    b1 = jax.random.normal(k[8], (2, 4, 16, 128), dtype=jnp.float32)
    b2 = jax.random.normal(k[9], (2, 4, 16, 64), dtype=jnp.float32)
    b3 = jax.random.normal(k[10], (2, 4, 16, 32), dtype=jnp.float32)
    b4 = jax.random.normal(k[11], (2, 4, 16, 128), dtype=jnp.float32)
    bs = [b1, b2, b3, b4]
    bref = jnp.concatenate(bs, axis=-1)
    y_dma = jax.block_until_ready(concat_last_dim(bs, mode="dma"))
    assert jnp.array_equal(y_dma, bref), "dma path mismatch"

    print("KERNEL_OK")
</pallas_src>

<mosaic_0001>
module attributes {stable_mosaic.version = 11 : i64} {
  func.func @kernel(%arg0: i32, %arg1: memref<64x16xf32, #tpu.memory_space<vmem>>, %arg2: memref<64x8xf32, #tpu.memory_space<vmem>>, %arg3: memref<64x32xf32, #tpu.memory_space<vmem>>, %arg4: memref<64x16xf32, #tpu.memory_space<vmem>>, %arg5: memref<64x72xf32, #tpu.memory_space<vmem>>) attributes {dimension_semantics = [#tpu.dimension_semantics<parallel>], iteration_bounds = array<i64: 2>, scalar_prefetch = 0 : i64, scratch_operands = 0 : i64, tpu.core_type = #tpu.core_type<tc>, window_params = [{transform_indices = @transform_0, window_bounds = array<i64: 64, 16>}, {transform_indices = @transform_1, window_bounds = array<i64: 64, 8>}, {transform_indices = @transform_2, window_bounds = array<i64: 64, 32>}, {transform_indices = @transform_3, window_bounds = array<i64: 64, 16>}, {transform_indices = @transform_4, window_bounds = array<i64: 64, 72>}]} {
    %c0 = arith.constant 0 : index
    %c0_0 = arith.constant 0 : index
    %0 = vector.load %arg1[%c0, %c0_0] : memref<64x16xf32, #tpu.memory_space<vmem>>, vector<64x16xf32>
    %c0_1 = arith.constant 0 : index
    %c0_2 = arith.constant 0 : index
    %1 = vector.load %arg2[%c0_1, %c0_2] : memref<64x8xf32, #tpu.memory_space<vmem>>, vector<64x8xf32>
    %c0_3 = arith.constant 0 : index
    %c0_4 = arith.constant 0 : index
    %2 = vector.load %arg3[%c0_3, %c0_4] : memref<64x32xf32, #tpu.memory_space<vmem>>, vector<64x32xf32>
    %c0_5 = arith.constant 0 : index
    %c0_6 = arith.constant 0 : index
    %3 = vector.load %arg4[%c0_5, %c0_6] : memref<64x16xf32, #tpu.memory_space<vmem>>, vector<64x16xf32>
    %4 = tpu.concatenate %0, %1, %2, %3 in 1 : vector<64x16xf32>, vector<64x8xf32>, vector<64x32xf32>, vector<64x16xf32> -> vector<64x72xf32>
    %c0_7 = arith.constant 0 : index
    %c0_8 = arith.constant 0 : index
    %5 = vector.load %arg5[%c0_7, %c0_8] : memref<64x72xf32, #tpu.memory_space<vmem>>, vector<64x72xf32>
    tpu.vector_store %arg5[%c0_7, %c0_8], %4 {strides = array<i32>} : memref<64x72xf32, #tpu.memory_space<vmem>>, vector<64x72xf32>,
    return
  }
  func.func @transform_0(%arg0: i32) -> (i32, i32) {
    %c0_i32 = arith.constant 0 : i32
    %c0_i32_0 = arith.constant 0 : i32
    return %arg0, %c0_i32 : i32, i32
  }
  func.func @transform_1(%arg0: i32) -> (i32, i32) {
    %c0_i32 = arith.constant 0 : i32
    %c0_i32_0 = arith.constant 0 : i32
    return %arg0, %c0_i32 : i32, i32
  }
  func.func @transform_2(%arg0: i32) -> (i32, i32) {
    %c0_i32 = arith.constant 0 : i32
    %c0_i32_0 = arith.constant 0 : i32
    return %arg0, %c0_i32 : i32, i32
  }
  func.func @transform_3(%arg0: i32) -> (i32, i32) {
    %c0_i32 = arith.constant 0 : i32
    %c0_i32_0 = arith.constant 0 : i32
    return %arg0, %c0_i32 : i32, i32
  }
  func.func @transform_4(%arg0: i32) -> (i32, i32) {
    %c0_i32 = arith.constant 0 : i32
    %c0_i32_0 = arith.constant 0 : i32
    return %arg0, %c0_i32 : i32, i32
  }
}

</mosaic_0001>

<bundles_post_ra>
// kernel: tpu_custom_call.1
= control target key start
LH: loop header
LB: loop body
LE: loop exit
PB: predicated region body
PF: predicated region fallthrough
CT: control target
= control target key end

     0   :  { %s587_s15 = smov 0   ;;  %s672_s0 = inlined_call_operand.vmem [shape: f32[128,16], index: 0, kind: input, shape index: {}]   ;;  %s673_s1 = inlined_call_operand.vmem [shape: f32[128,8], index: 1, kind: input, shape index: {}]   ;;  %s674_s2 = inlined_call_operand.vmem [shape: f32[128,32], index: 2, kind: input, shape index: {}]   ;;  %s675_s3 = inlined_call_operand.vmem [shape: f32[128,16], index: 3, kind: input, shape index: {}]   ;;  %s676_s4 = inlined_call_operand.vmem [shape: f32[128,72], index: 4, kind: output, shape index: {}]  }
   0x1 LB: > { %s523_s16 = sadd.s32 4294967295, %s557_s15   ;;  %p527_p0 = scmp.ge.s32.totalorder %s557_s15, 1  ;;  %s557_s15 = sphi %s587_s15, %s14_s15  }
   0x2   : > { %p196_p1 = scmp.lt.s32.totalorder %s557_s15, 3 }
   0x4   : > { %p197_p2 = pnand %p527_p0, %p196_p1 }
   0x5   : > { %s528_s17 = sshll.u32 (!%p197_p2), %s523_s16, 3  ;;  %s559_s22 = smov (!%p197_p2), 16  }
   0x6   : > { %200 = sbr.rel (%p197_p2) target bundleno = 189 (0xbd), region = 36  ;;  %p238_p3 = scmp.lt.s32.totalorder (!%p197_p2), %s528_s17, 15 }
   0x7   : > { %s560_s26 = smov (!%p197_p2), 24   ;;  %s561_s30 = smov (!%p197_p2), 56  }
   0xb   : > { %s678_s17 = smov (!%p238_p3, %s528_s17), 15  ;;  %vm395_vm0 = vcmask 130048   ;;  %vm413_vm1 = vcmask 457728   ;;  %vm404_vm2 = vcmask 195584   ;;  %vm422_vm3 = vcmask 588800  }
   0xc   : > { %s595_s18 = sshll.u32 %s678_s17, 3 }
   0xd   : > { %s247_s21 = scalar_lea.vmem %s673_s1, %s595_s18  ;;  %s253_s25 = scalar_lea.vmem %s674_s2, %s595_s18 }
   0xe   : > { %v277_v0 = vld [vmem:[%s247_s21 + $0x10] sm:$0xff]  ;;  %v275_v1 = vld [vmem:[%s247_s21] sm:$0xff]  ;;  %v278_v3 = vld [vmem:[%s247_s21 + $0x18] sm:$0xff]  ;;  %s259_s29 = scalar_lea.vmem %s675_s3, %s595_s18  ;;  %s613_s7 = scalar_lea.vmem %s672_s0, %s595_s18 }
   0xf   : > { %311 = vrot.lane.b32.xlu1 %v277_v0, %s559_s22  ;;  %307 = vrot.lane.b32.xlu0 %v275_v1, %s559_s22  ;;  %v279_v2 = vld [vmem:[%s247_s21 + $0x20] sm:$0xff]  ;;  %v276_v4 = vld [vmem:[%s247_s21 + $0x8] sm:$0xff]  ;;  %s621_s10 = scalar_lea.vmem %s676_s4, %s595_s18 }
  0x10   : > { %315 = vrot.lane.b32.xlu2 %v279_v2, %s559_s22  ;;  %v280_v5 = vld [vmem:[%s247_s21 + $0x28] sm:$0xff]  ;;  %v282_v6 = vld [vmem:[%s247_s21 + $0x38] sm:$0xff]  ;;  %v281_v7 = vld [vmem:[%s247_s21 + $0x30] sm:$0xff] }
  0x11   : > { %v283_v8 = vld [vmem:[%s253_s25] sm:$0xff]  ;;  %v285_v9 = vld [vmem:[%s253_s25 + $0x10] sm:$0xff]  ;;  %v284_v10 = vld [vmem:[%s253_s25 + $0x8] sm:$0xff] }
  0x12   : > { %v286_v11 = vld [vmem:[%s253_s25 + $0x18] sm:$0xff]  ;;  %v288_v12 = vld [vmem:[%s253_s25 + $0x28] sm:$0xff]  ;;  %v287_v13 = vld [vmem:[%s253_s25 + $0x20] sm:$0xff] }
  0x13   : > { %v289_v14 = vld [vmem:[%s253_s25 + $0x30] sm:$0xff]  ;;  %v291_v15 = vld [vmem:[%s259_s29] sm:$0xff]  ;;  %v290_v16 = vld [vmem:[%s253_s25 + $0x38] sm:$0xff] }
  0x14   : > { %v292_v17 = vld [vmem:[%s259_s29 + $0x8] sm:$0xff]  ;;  %v294_v18 = vld [vmem:[%s259_s29 + $0x18] sm:$0xff]  ;;  %v293_v19 = vld [vmem:[%s259_s29 + $0x10] sm:$0xff] }
  0x15   : > { %v295_v20 = vld [vmem:[%s259_s29 + $0x20] sm:$0xff]  ;;  %v297_v21 = vld [vmem:[%s259_s29 + $0x30] sm:$0xff]  ;;  %v296_v22 = vld [vmem:[%s259_s29 + $0x28] sm:$0xff] }
  0x16   : > { %v298_v23 = vld [vmem:[%s259_s29 + $0x38] sm:$0xff]  ;;  %v268_v36 = vld [vmem:[%s613_s7 + $0x8] sm:$0xff]  ;;  %v271_v42 = vld [vmem:[%s613_s7 + $0x20] sm:$0xff] }
  0x17   : > { %313 = vrot.lane.b32.xlu1 %v278_v3, %s559_s22  ;;  %309 = vrot.lane.b32.xlu0 %v276_v4, %s559_s22  ;;  %v267_v48 = vld [vmem:[%s613_s7] sm:$0xff]  ;;  %v274_v51 = vld [vmem:[%s613_s7 + $0x38] sm:$0xff] }
  0x18   : > { %317 = vrot.lane.b32.xlu2 %v280_v5, %s559_s22  ;;  %v270_v59 = vld [vmem:[%s613_s7 + $0x18] sm:$0xff]  ;;  %v269_v61 = vld [vmem:[%s613_s7 + $0x10] sm:$0xff] }
  0x1f   : > { %321 = vrot.lane.b32.xlu1 %v282_v6, %s559_s22  ;;  %319 = vrot.lane.b32.xlu0 %v281_v7, %s559_s22  ;;  %v273_v6 = vld [vmem:[%s613_s7 + $0x30] sm:$0xff]  ;;  %v272_v7 = vld [vmem:[%s613_s7 + $0x28] sm:$0xff] }
  0x20   : > { %339 = vrot.lane.b32.xlu2 %v283_v8, %s560_s26 }
  0x27   : > { %343 = vrot.lane.b32.xlu1 %v285_v9, %s560_s26  ;;  %341 = vrot.lane.b32.xlu0 %v284_v10, %s560_s26 }
  0x28   : > { %345 = vrot.lane.b32.xlu2 %v286_v11, %s560_s26 }
  0x2f   : > { %349 = vrot.lane.b32.xlu1 %v288_v12, %s560_s26  ;;  %347 = vrot.lane.b32.xlu0 %v287_v13, %s560_s26 }
  0x30   : > { %351 = vrot.lane.b32.xlu2 %v289_v14, %s560_s26 }
  0x37   : > { %371 = vrot.lane.b32.xlu1 %v291_v15, %s561_s30  ;;  %353 = vrot.lane.b32.xlu0 %v290_v16, %s560_s26 }
  0x38   : > { %373 = vrot.lane.b32.xlu2 %v292_v17, %s561_s30 }
  0x3f   : > { %377 = vrot.lane.b32.xlu1 %v294_v18, %s561_s30  ;;  %375 = vrot.lane.b32.xlu0 %v293_v19, %s561_s30 }
  0x40   : > { %379 = vrot.lane.b32.xlu2 %v295_v20, %s561_s30 }
  0x47   : > { %383 = vrot.lane.b32.xlu1 %v297_v21, %s561_s30  ;;  %381 = vrot.lane.b32.xlu0 %v296_v22, %s561_s30 }
  0x48   : > { %385 = vrot.lane.b32.xlu2 %v298_v23, %s561_s30 }
  0x6a   : > { %v316_v24 = vpop.permute.xlu2 %315 }
  0x6b   : > { %v400_v44 = vsel %vm395_vm0, %v271_v42, %v316_v24 }
  0x72   : > { %v318_v25 = vpop.permute.xlu2 %317 }
  0x73   : > { %v401_v9 = vsel %vm395_vm0, %v272_v7, %v318_v25 }
  0x7a   : > { %v340_v26 = vpop.permute.xlu2 %339 }
  0x81   : > { %v312_v27 = vpop.permute.xlu1 %311  ;;  %v308_v28 = vpop.permute.xlu0 %307 }
  0x82   : > { %v346_v29 = vpop.permute.xlu2 %345  ;;  %v396_v50 = vsel %vm395_vm0, %v267_v48, %v308_v28  ;;  %v398_v63 = vsel %vm395_vm0, %v269_v61, %v312_v27 }
  0x83   : > { %v405_v53 = vsel %vm404_vm2, %v396_v50, %v340_v26 }
  0x89   : > { %v314_v30 = vpop.permute.xlu1 %313  ;;  %v310_v31 = vpop.permute.xlu0 %309 }
  0x8a   : > { %v352_v32 = vpop.permute.xlu2 %351  ;;  %v397_v37 = vsel %vm395_vm0, %v268_v36, %v310_v31  ;;  %v399_v62 = vsel %vm395_vm0, %v270_v59, %v314_v30 }
  0x8b   : > { %v408_v0 = vsel %vm404_vm2, %v399_v62, %v346_v29 }
  0x91   : > { %v322_v33 = vpop.permute.xlu1 %321  ;;  %v320_v34 = vpop.permute.xlu0 %319 }
  0x92   : > { %v374_v35 = vpop.permute.xlu2 %373  ;;  %v403_v54 = vsel %vm395_vm0, %v274_v51, %v322_v33  ;;  %v402_v8 = vsel %vm395_vm0, %v273_v6, %v320_v34 }
  0x93   : > { %v411_v10 = vsel %vm404_vm2, %v402_v8, %v352_v32 }
  0x99   : > { %v344_v38 = vpop.permute.xlu1 %343  ;;  %v342_v39 = vpop.permute.xlu0 %341 }
  0x9a   : > { %v406_v40 = vsel %vm404_vm2, %v397_v37, %v342_v39  ;;  %v380_v43 = vpop.permute.xlu2 %379  ;;  %v407_v1 = vsel %vm404_vm2, %v398_v63, %v344_v38 }
  0x9b   : > { %v415_v41 = vsel %vm413_vm1, %v406_v40, %v374_v35 }
  0x9c   : > { %424 = vst.msk [vmem:[%s621_s10 + $0x8] sm:$0xff] %vm422_vm3, %v415_v41 }
  0xa1   : > { %v350_v45 = vpop.permute.xlu1 %349  ;;  %v348_v46 = vpop.permute.xlu0 %347 }
  0xa2   : > { %v409_v47 = vsel %vm404_vm2, %v400_v44, %v348_v46  ;;  %v386_v52 = vpop.permute.xlu2 %385  ;;  %v410_v11 = vsel %vm404_vm2, %v401_v9, %v350_v45 }
  0xa3   : > { %v418_v49 = vsel %vm413_vm1, %v409_v47, %v380_v43 }
  0xa4   : > { %427 = vst.msk [vmem:[%s621_s10 + $0x20] sm:$0xff] %vm422_vm3, %v418_v49 }
  0xa9   : > { %v372_v55 = vpop.permute.xlu1 %371  ;;  %v354_v56 = vpop.permute.xlu0 %353 }
  0xaa   : > { %v414_v57 = vsel %vm413_vm1, %v405_v53, %v372_v55  ;;  %v412_v58 = vsel %vm404_vm2, %v403_v54, %v354_v56 }
  0xab   : > { %423 = vst.msk [vmem:[%s621_s10] sm:$0xff] %vm422_vm3, %v414_v57  ;;  %v421_v60 = vsel %vm413_vm1, %v412_v58, %v386_v52 }
  0xac   : > { %430 = vst.msk [vmem:[%s621_s10 + $0x38] sm:$0xff] %vm422_vm3, %v421_v60 }
  0xb1   : > { %v378_v2 = vpop.permute.xlu1 %377  ;;  %v376_v3 = vpop.permute.xlu0 %375 }
  0xb2   : > { %v417_v4 = vsel %vm413_vm1, %v408_v0, %v378_v2  ;;  %v416_v5 = vsel %vm413_vm1, %v407_v1, %v376_v3 }
  0xb3   : > { %426 = vst.msk [vmem:[%s621_s10 + $0x18] sm:$0xff] %vm422_vm3, %v417_v4 }
  0xb4   : > { %425 = vst.msk [vmem:[%s621_s10 + $0x10] sm:$0xff] %vm422_vm3, %v416_v5 }
  0xb9   : > { %v384_v12 = vpop.permute.xlu1 %383  ;;  %v382_v13 = vpop.permute.xlu0 %381 }
  0xba   : > { %v420_v14 = vsel %vm413_vm1, %v411_v10, %v384_v12  ;;  %v419_v15 = vsel %vm413_vm1, %v410_v11, %v382_v13 }
  0xbb   : > { %429 = vst.msk [vmem:[%s621_s10 + $0x30] sm:$0xff] %vm422_vm3, %v420_v14 }
  0xbc   : > { %428 = vst.msk [vmem:[%s621_s10 + $0x28] sm:$0xff] %vm422_vm3, %v419_v15 }
  0xbd PF: > { %s14_s15 = sadd.s32 1, %s557_s15  }
  0xbe   : > { %p11_p4 = scmp.ge.s32.totalorder %s14_s15, 4  }
  0xc0   :  { %13 = sbr.rel (!%p11_p4) target bundleno = 1 (0x1), region = 75 }

</bundles_post_ra>
